<compile_context>
chip_gen: v7x
topology: tpu7x:2x2x1
jax: 0.10.0
libtpu: 0.0.40
codegen_flags: <defaults>
</compile_context>

<pallas_src>
import functools

import jax
import jax.numpy as jnp
from jax.experimental import pallas as pl
from jax.experimental.pallas import tpu as pltpu

HIDDEN = 64
OUT = 3
OUT_PAD = 8  # pad output features to a full sublane -> unmasked stores
LANE = 128
TM_CAP = 8192


def _sir_pinn_kernel(t_ref, w1_ref, b1_ref, w2_ref, b2_ref, w3_ref, b3_ref,
                     o_ref, *, compute_dtype):
    cd = compute_dtype
    t = t_ref[...]                                                 # (1, tm), cd

    # Layer 1: Linear(1, 64).  K=1 matmul == outer-product broadcast -> VPU
    # (no MXU pass): (64,1)*(1,tm)+(64,1) -> (64,tm), all in compute dtype.
    h1 = jnp.tanh(w1_ref[...] * t + b1_ref[...])                   # (64, tm)

    # Layer 2: Linear(64, 64): (64,64) @ (64,tm) on the MXU, f32 accumulate,
    # f32 bias, batch fills the lane/N dimension.
    pre2 = jnp.dot(w2_ref[...], h1,
                   preferred_element_type=jnp.float32) + b2_ref[...]
    h2 = jnp.tanh(pre2.astype(cd))                                 # (64, tm)

    # Layer 3: Linear(64, 3) zero-padded to 8 rows -> dense (8, tm) result.
    logits = jnp.dot(w3_ref[...], h2,
                     preferred_element_type=jnp.float32) + b3_ref[...]

    # sigmoid(x) = 0.5 * (1 + tanh(0.5 * x)): single EUP op (vs exp + recip);
    # the mul/add go to the VPU which has slack.
    y = 0.5 * (1.0 + jnp.tanh((0.5 * logits).astype(cd)))
    o_ref[...] = y.astype(o_ref.dtype)


def _auto_compute_dtype():
    """bf16 on v6e/v7x (bf16 VPU/EUP path), f32 on v5e and anything else."""
    try:
        kind = jax.devices()[0].device_kind.lower()
    except Exception:  # pragma: no cover - defensive
        return jnp.float32
    if "v6" in kind or "v7" in kind:
        return jnp.bfloat16
    return jnp.float32


def _choose_tile(B):
    """Pick a lane-aligned batch tile and padded batch size.

    Targets >= 4 grid steps (>= 2 per v7x TensorCore) when the batch is large
    enough, with the tile capped at 8192 so per-step compute dominates the
    ~0.35us fixed per-step pipeline overhead while staying far under VMEM.
    """
    bp = -(-B // LANE) * LANE                   # lane-align the batch
    tm = min(TM_CAP, (bp // 4) // LANE * LANE)  # aim for >= 4 steps
    tm = max(tm, LANE)
    bp = -(-bp // tm) * tm                      # pad batch to a tile multiple
    return tm, bp


@functools.partial(jax.jit, static_argnames=("tm", "bp", "compute_dtype"))
def _forward_jit(t, params, *, tm, bp, compute_dtype):
    B = t.shape[0]
    cd = compute_dtype
    f32 = jnp.float32

    # Param prep (tiny; fused by XLA under jit).  PyTorch layout (out, in).
    w1 = params["w1"].astype(cd)                          # (64, 1)
    b1 = params["b1"].astype(cd).reshape(HIDDEN, 1)       # (64, 1)
    w2 = params["w2"].astype(cd)                          # (64, 64)
    b2 = params["b2"].astype(f32).reshape(HIDDEN, 1)      # f32: adds into f32 acc
    w3 = jnp.zeros((OUT_PAD, HIDDEN), cd).at[:OUT].set(params["w3"].astype(cd))
    b3 = jnp.zeros((OUT_PAD, 1), f32).at[:OUT, 0].set(params["b3"].astype(f32))

    # Batch onto the lane (last) axis and pad to a multiple of the tile.
    t_lane = t.astype(cd).reshape(1, B)
    if bp != B:
        t_lane = jnp.pad(t_lane, ((0, 0), (0, bp - B)))

    grid = (bp // tm,)
    kernel = functools.partial(_sir_pinn_kernel, compute_dtype=cd)

    itm = jnp.dtype(cd).itemsize
    cost = pl.CostEstimate(
        flops=2 * HIDDEN * HIDDEN * bp + 2 * OUT_PAD * HIDDEN * bp
        + 4 * HIDDEN * bp,
        transcendentals=(2 * HIDDEN + OUT_PAD) * bp,
        bytes_accessed=bp * itm + OUT_PAD * bp * 4
        + (HIDDEN * HIDDEN + OUT_PAD * HIDDEN + 2 * HIDDEN) * itm
        + (HIDDEN + OUT_PAD) * 4,
    )

    out = pl.pallas_call(
        kernel,
        out_shape=jax.ShapeDtypeStruct((OUT_PAD, bp), jnp.float32),
        grid_spec=pl.GridSpec(
            grid=grid,
            in_specs=[
                pl.BlockSpec((1, tm), lambda i: (0, i)),     # t tile (lane-dense)
                pl.BlockSpec(w1.shape, lambda i: (0, 0)),    # weights/biases are
                pl.BlockSpec(b1.shape, lambda i: (0, 0)),    # grid-invariant ->
                pl.BlockSpec(w2.shape, lambda i: (0, 0)),    # stay VMEM-resident
                pl.BlockSpec(b2.shape, lambda i: (0, 0)),
                pl.BlockSpec(w3.shape, lambda i: (0, 0)),
                pl.BlockSpec(b3.shape, lambda i: (0, 0)),
            ],
            out_specs=pl.BlockSpec((OUT_PAD, tm), lambda i: (0, i)),
        ),
        compiler_params=pltpu.CompilerParams(
            dimension_semantics=("parallel",),   # batch tiles shard across v7x TCs
        ),
        cost_estimate=cost,
    )(t_lane, w1, b1, w2, b2, w3, b3)

    # (OUT_PAD, bp) -> (B, 3).
    # TODO(synk): consumers that can take batch-last (3, B) should read
    # out[:OUT, :B] directly and skip this (fused) transpose pass.
    return out[:OUT, :B].T


def sir_pinn_forward(t, params, *, tm=None, compute_dtype=None):
    """Forward pass of SIR_PINN.

    t: (B, 1) float32 (PyTorch layout).  Returns (B, 3) float32.
    params: PyTorch-layout weights: w* is (out_features, in_features),
            b* is (out_features,).
    compute_dtype: None -> auto (bf16 on v6e/v7x, f32 on v5e); or pass
            jnp.float32 / jnp.bfloat16 explicitly.  bf16 changes PINN
            residual precision (use ~5e-2 tolerance vs the f32 reference).
    """
    if compute_dtype is None:
        compute_dtype = _auto_compute_dtype()
    B = t.shape[0]
    if tm is None:
        tile, bp = _choose_tile(B)
    else:
        assert tm % LANE == 0, "tm must be a multiple of 128 (lane width)"
        tile = tm
        bp = -(-max(B, LANE) // tile) * tile
    return _forward_jit(t, params, tm=tile, bp=bp, compute_dtype=compute_dtype)


def init_params(key):
    """PyTorch nn.Linear default init; weights stored (out_features, in_features)."""
    ks = jax.random.split(key, 6)

    def linear(kw, kb, fan_in, fan_out):
        bound = 1.0 / (fan_in ** 0.5)
        w = jax.random.uniform(kw, (fan_out, fan_in), jnp.float32, -bound, bound)
        b = jax.random.uniform(kb, (fan_out,), jnp.float32, -bound, bound)
        return w, b

    w1, b1 = linear(ks[0], ks[1], 1, HIDDEN)
    w2, b2 = linear(ks[2], ks[3], HIDDEN, HIDDEN)
    w3, b3 = linear(ks[4], ks[5], HIDDEN, OUT)
    return {"w1": w1, "b1": b1, "w2": w2, "b2": b2, "w3": w3, "b3": b3}


def reference_forward(t, p):
    h1 = jnp.tanh(t @ p["w1"].T + p["b1"])
    h2 = jnp.tanh(h1 @ p["w2"].T + p["b2"])
    return jax.nn.sigmoid(h2 @ p["w3"].T + p["b3"])


if __name__ == "__main__":
    key = jax.random.PRNGKey(0)
    k_param, k_t = jax.random.split(key)

    params = init_params(k_param)

    # Small, deterministic inputs.
    B = 256
    t = jax.random.uniform(k_t, (B, 1), jnp.float32, 0.0, 10.0)  # time samples
    ref = reference_forward(t, params)

    # 1) f32 path (all generations): tight tolerance vs the reference.
    out_f32 = jax.block_until_ready(
        sir_pinn_forward(t, params, compute_dtype=jnp.float32))
    assert out_f32.shape == (B, OUT)
    assert jnp.allclose(out_f32, ref, atol=1e-5, rtol=1e-5)

    # 2) Non-lane-aligned batch exercises the pad-and-slice path.
    B2 = 200
    t2 = jax.random.uniform(k_t, (B2, 1), jnp.float32, 0.0, 10.0)
    out2 = jax.block_until_ready(
        sir_pinn_forward(t2, params, compute_dtype=jnp.float32))
    assert out2.shape == (B2, OUT)
    assert jnp.allclose(out2, reference_forward(t2, params), atol=1e-5, rtol=1e-5)

    # 3) Auto compute dtype (bf16 on v6e/v7x, f32 elsewhere), dtype-appropriate tol.
    cd = _auto_compute_dtype()
    out_auto = jax.block_until_ready(sir_pinn_forward(t, params))
    tol = 1e-5 if cd == jnp.float32 else 5e-2
    assert out_auto.shape == (B, OUT)
    assert jnp.allclose(out_auto, ref, atol=tol, rtol=tol)

    print("KERNEL_OK")
</pallas_src>

<mosaic_0001>
module attributes {stable_mosaic.version = 11 : i64} {
  func.func @_sir_pinn_kernel(%arg0: i32, %arg1: memref<1x128xf32, #tpu.memory_space<vmem>>, %arg2: memref<64x1xf32, #tpu.memory_space<vmem>>, %arg3: memref<64x1xf32, #tpu.memory_space<vmem>>, %arg4: memref<64x64xf32, #tpu.memory_space<vmem>>, %arg5: memref<64x1xf32, #tpu.memory_space<vmem>>, %arg6: memref<8x64xf32, #tpu.memory_space<vmem>>, %arg7: memref<8x1xf32, #tpu.memory_space<vmem>>, %arg8: memref<8x128xf32, #tpu.memory_space<vmem>>) attributes {dimension_semantics = [#tpu.dimension_semantics<parallel>], iteration_bounds = array<i64: 2>, scalar_prefetch = 0 : i64, scratch_operands = 0 : i64, tpu.core_type = #tpu.core_type<tc>, window_params = [{transform_indices = @transform_0, window_bounds = array<i64: 1, 128>}, {pipeline_mode = #tpu.pipeline_mode<synchronous>, transform_indices = @transform_1, window_bounds = array<i64: 64, 1>}, {pipeline_mode = #tpu.pipeline_mode<synchronous>, transform_indices = @transform_2, window_bounds = array<i64: 64, 1>}, {pipeline_mode = #tpu.pipeline_mode<synchronous>, transform_indices = @transform_3, window_bounds = array<i64: 64, 64>}, {pipeline_mode = #tpu.pipeline_mode<synchronous>, transform_indices = @transform_4, window_bounds = array<i64: 64, 1>}, {pipeline_mode = #tpu.pipeline_mode<synchronous>, transform_indices = @transform_5, window_bounds = array<i64: 8, 64>}, {pipeline_mode = #tpu.pipeline_mode<synchronous>, transform_indices = @transform_6, window_bounds = array<i64: 8, 1>}, {transform_indices = @transform_7, window_bounds = array<i64: 8, 128>}]} {
    %c0 = arith.constant 0 : index
    %c0_0 = arith.constant 0 : index
    %0 = vector.load %arg1[%c0, %c0_0] : memref<1x128xf32, #tpu.memory_space<vmem>>, vector<1x128xf32>
    %c0_1 = arith.constant 0 : index
    %c0_2 = arith.constant 0 : index
    %1 = vector.load %arg2[%c0_1, %c0_2] : memref<64x1xf32, #tpu.memory_space<vmem>>, vector<64x1xf32>
    %2 = vector.broadcast %1 : vector<64x1xf32> to vector<64x128xf32>
    %3 = vector.broadcast %0 : vector<1x128xf32> to vector<64x128xf32>
    %4 = arith.mulf %2, %3 : vector<64x128xf32>
    %c0_3 = arith.constant 0 : index
    %c0_4 = arith.constant 0 : index
    %5 = vector.load %arg3[%c0_3, %c0_4] : memref<64x1xf32, #tpu.memory_space<vmem>>, vector<64x1xf32>
    %6 = vector.broadcast %5 : vector<64x1xf32> to vector<64x128xf32>
    %7 = arith.addf %4, %6 : vector<64x128xf32>
    %8 = math.tanh %7 : vector<64x128xf32>
    %c0_5 = arith.constant 0 : index
    %c0_6 = arith.constant 0 : index
    %9 = vector.load %arg4[%c0_5, %c0_6] : memref<64x64xf32, #tpu.memory_space<vmem>>, vector<64x64xf32>
    %cst = arith.constant dense<0.000000e+00> : vector<64x128xf32>
    %10 = tpu.matmul %9, %8, %cst {dimension_numbers = #tpu.dot_dimension_numbers<[1], [0], [0], [1], [0, 0, 1, 1], [], []>} : vector<64x64xf32>, vector<64x128xf32>, vector<64x128xf32> -> vector<64x128xf32>
    %c0_7 = arith.constant 0 : index
    %c0_8 = arith.constant 0 : index
    %11 = vector.load %arg5[%c0_7, %c0_8] : memref<64x1xf32, #tpu.memory_space<vmem>>, vector<64x1xf32>
    %12 = vector.broadcast %11 : vector<64x1xf32> to vector<64x128xf32>
    %13 = arith.addf %10, %12 : vector<64x128xf32>
    %14 = math.tanh %13 : vector<64x128xf32>
    %c0_9 = arith.constant 0 : index
    %c0_10 = arith.constant 0 : index
    %15 = vector.load %arg6[%c0_9, %c0_10] : memref<8x64xf32, #tpu.memory_space<vmem>>, vector<8x64xf32>
    %cst_11 = arith.constant dense<0.000000e+00> : vector<8x128xf32>
    %16 = tpu.matmul %15, %14, %cst_11 {dimension_numbers = #tpu.dot_dimension_numbers<[1], [0], [0], [1], [0, 0, 1, 1], [], []>} : vector<8x64xf32>, vector<64x128xf32>, vector<8x128xf32> -> vector<8x128xf32>
    %c0_12 = arith.constant 0 : index
    %c0_13 = arith.constant 0 : index
    %17 = vector.load %arg7[%c0_12, %c0_13] : memref<8x1xf32, #tpu.memory_space<vmem>>, vector<8x1xf32>
    %18 = vector.broadcast %17 : vector<8x1xf32> to vector<8x128xf32>
    %19 = arith.addf %16, %18 : vector<8x128xf32>
    %cst_14 = arith.constant 5.000000e-01 : f32
    %20 = vector.broadcast %cst_14 : f32 to vector<8x128xf32>
    %21 = arith.mulf %20, %19 : vector<8x128xf32>
    %22 = math.tanh %21 : vector<8x128xf32>
    %cst_15 = arith.constant 1.000000e+00 : f32
    %23 = vector.broadcast %cst_15 : f32 to vector<8x128xf32>
    %24 = arith.addf %23, %22 : vector<8x128xf32>
    %cst_16 = arith.constant 5.000000e-01 : f32
    %25 = vector.broadcast %cst_16 : f32 to vector<8x128xf32>
    %26 = arith.mulf %25, %24 : vector<8x128xf32>
    %c0_17 = arith.constant 0 : index
    %c0_18 = arith.constant 0 : index
    %27 = vector.load %arg8[%c0_17, %c0_18] : memref<8x128xf32, #tpu.memory_space<vmem>>, vector<8x128xf32>
    tpu.vector_store %arg8[%c0_17, %c0_18], %26 {strides = array<i32>} : memref<8x128xf32, #tpu.memory_space<vmem>>, vector<8x128xf32>,
    return
  }
  func.func @transform_0(%arg0: i32) -> (i32, i32) {
    %c0_i32 = arith.constant 0 : i32
    %c0_i32_0 = arith.constant 0 : i32
    return %c0_i32, %arg0 : i32, i32
  }
  func.func @transform_1(%arg0: i32) -> (i32, i32) {
    %c0_i32 = arith.constant 0 : i32
    %c0_i32_0 = arith.constant 0 : i32
    %c0_i32_1 = arith.constant 0 : i32
    return %c0_i32, %c0_i32_0 : i32, i32
  }
  func.func @transform_2(%arg0: i32) -> (i32, i32) {
    %c0_i32 = arith.constant 0 : i32
    %c0_i32_0 = arith.constant 0 : i32
    %c0_i32_1 = arith.constant 0 : i32
    return %c0_i32, %c0_i32_0 : i32, i32
  }
  func.func @transform_3(%arg0: i32) -> (i32, i32) {
    %c0_i32 = arith.constant 0 : i32
    %c0_i32_0 = arith.constant 0 : i32
    %c0_i32_1 = arith.constant 0 : i32
    return %c0_i32, %c0_i32_0 : i32, i32
  }
  func.func @transform_4(%arg0: i32) -> (i32, i32) {
    %c0_i32 = arith.constant 0 : i32
    %c0_i32_0 = arith.constant 0 : i32
    %c0_i32_1 = arith.constant 0 : i32
    return %c0_i32, %c0_i32_0 : i32, i32
  }
  func.func @transform_5(%arg0: i32) -> (i32, i32) {
    %c0_i32 = arith.constant 0 : i32
    %c0_i32_0 = arith.constant 0 : i32
    %c0_i32_1 = arith.constant 0 : i32
    return %c0_i32, %c0_i32_0 : i32, i32
  }
  func.func @transform_6(%arg0: i32) -> (i32, i32) {
    %c0_i32 = arith.constant 0 : i32
    %c0_i32_0 = arith.constant 0 : i32
    %c0_i32_1 = arith.constant 0 : i32
    return %c0_i32, %c0_i32_0 : i32, i32
  }
  func.func @transform_7(%arg0: i32) -> (i32, i32) {
    %c0_i32 = arith.constant 0 : i32
    %c0_i32_0 = arith.constant 0 : i32
    return %c0_i32, %arg0 : i32, i32
  }
}

</mosaic_0001>

<bundles_post_ra>
// kernel: _forward_jit.1
= control target key start
LH: loop header
LB: loop body
LE: loop exit
PB: predicated region body
PF: predicated region fallthrough
CT: control target
= control target key end

     0   :  { %s945_s24 = smov 0   ;;  %s1081_s0 = inlined_call_operand.vmem [shape: f32[1,256], index: 0, kind: input, shape index: {}]   ;;  %s1082_s1 = inlined_call_operand.vmem [shape: f32[64,1], index: 1, kind: input, shape index: {}]   ;;  %s1083_s2 = inlined_call_operand.vmem [shape: f32[64,1], index: 2, kind: input, shape index: {}]   ;;  %s1084_s3 = inlined_call_operand.vmem [shape: f32[64,64], index: 3, kind: input, shape index: {}]   ;;  %s1085_s4 = inlined_call_operand.vmem [shape: f32[64,1], index: 4, kind: input, shape index: {}]   ;;  %s1086_s5 = inlined_call_operand.vmem [shape: f32[8,64], index: 5, kind: input, shape index: {}]   ;;  %s1087_s6 = inlined_call_operand.vmem [shape: f32[8,1], index: 6, kind: input, shape index: {}]   ;;  %s1088_s7 = inlined_call_operand.vmem [shape: f32[8,256], index: 7, kind: output, shape index: {}]  }
   0x1 LB: > { %s727_s25 = sadd.s32 4294967295, %s899_s24   ;;  %p731_p0 = scmp.ge.s32.totalorder %s899_s24, 1  ;;  %s899_s24 = sphi %s945_s24, %s17_s24  }
   0x2   : > { %p235_p1 = scmp.lt.s32.totalorder %s899_s24, 3 }
   0x4   : > { %p236_p2 = pnand %p731_p0, %p235_p1 }
   0x5   : > { %v334_v0 = vld [vmem:[%s1083_s2] sm:$0xff] (!%p236_p2)  ;;  %v901_v2 = vmov (!%p236_p2), 0   ;;  %v335_v3 = vld [vmem:[%s1083_s2 + $0x8] sm:$0xff] (!%p236_p2)  ;;  %v275_v5 = vld [vmem:[%s1082_s1 + $0x18] sm:$0xff] (!%p236_p2)  ;;  %vm454_vm0 = vcmask (!%p236_p2), 523264   ;;  %p264_p3 = scmp.lt.s32.totalorder (!%p236_p2), %s727_s25, 1 }
   0x6   : > { %239 = sbr.rel (%p236_p2) target bundleno = 658 (0x292), region = 48  ;;  %v272_v1 = vld [vmem:[%s1082_s1] sm:$0xff] (!%p236_p2)  ;;  %858 = vset.pattern.permute.xlu1 (!%p236_p2), %v901_v2  ;;  %857 = vset.pattern.permute.xlu0 (!%p236_p2), %v901_v2  ;;  %v273_v4 = vld [vmem:[%s1082_s1 + $0x8] sm:$0xff] (!%p236_p2)  ;;  %v274_v6 = vld [vmem:[%s1082_s1 + $0x10] sm:$0xff] (!%p236_p2)  ;;  %vm903_vm1 = vmmov (!%p236_p2), 0  }
   0x7   : > { %344 = vperm.xlu1 (!%p236_p2), %858, %v334_v0   ;;  %282 = vperm.xlu0 (!%p236_p2), %857, %v272_v1   ;;  %v337_v7 = vld [vmem:[%s1083_s2 + $0x18] sm:$0xff] (!%p236_p2)  ;;  %v336_v8 = vld [vmem:[%s1083_s2 + $0x10] sm:$0xff] (!%p236_p2)  ;;  %v277_v9 = vld [vmem:[%s1082_s1 + $0x28] sm:$0xff] (!%p236_p2) }
   0x8   : > { %v276_v10 = vld [vmem:[%s1082_s1 + $0x20] sm:$0xff] (!%p236_p2)  ;;  %v339_v11 = vld [vmem:[%s1083_s2 + $0x28] sm:$0xff] (!%p236_p2)  ;;  %v279_v13 = vld [vmem:[%s1082_s1 + $0x38] sm:$0xff] (!%p236_p2) }
   0x9   : > { %v338_v12 = vld [vmem:[%s1083_s2 + $0x20] sm:$0xff] (!%p236_p2)  ;;  %v278_v14 = vld [vmem:[%s1082_s1 + $0x30] sm:$0xff] (!%p236_p2)  ;;  %v341_v15 = vld [vmem:[%s1083_s2 + $0x38] sm:$0xff] (!%p236_p2) }
   0xa   : > { %v340_v16 = vld [vmem:[%s1083_s2 + $0x30] sm:$0xff] (!%p236_p2)  ;;  %v407_v17 = vld [vmem:[%s1085_s4 + $0x8] sm:$0xff] (!%p236_p2)  ;;  %v406_v18 = vld [vmem:[%s1085_s4] sm:$0xff] (!%p236_p2) }
   0xb   : > { %349 = vperm.xlu1 (!%p236_p2), %858, %v335_v3   ;;  %287 = vperm.xlu0 (!%p236_p2), %857, %v273_v4   ;;  %v409_v19 = vld [vmem:[%s1085_s4 + $0x18] sm:$0xff] (!%p236_p2)  ;;  %v408_v20 = vld [vmem:[%s1085_s4 + $0x10] sm:$0xff] (!%p236_p2)  ;;  %v411_v21 = vld [vmem:[%s1085_s4 + $0x28] sm:$0xff] (!%p236_p2) }
   0xc   : > { %v410_v22 = vld [vmem:[%s1085_s4 + $0x20] sm:$0xff] (!%p236_p2)  ;;  %v413_v23 = vld [vmem:[%s1085_s4 + $0x38] sm:$0xff] (!%p236_p2)  ;;  %v412_v24 = vld [vmem:[%s1085_s4 + $0x30] sm:$0xff] (!%p236_p2) }
   0xd   : > { %v593_v25 = vld [vmem:[%s1087_s6] sm:$0xff]  ;;  %s1090_s25 = smov (!%p264_p3, %s727_s25), 1 }
   0xe   : > { %v398_v26 = vld [vmem:[%s1084_s3] sm:$0xff]  ;;  %s266_s15 = scalar_lea.vmem %s1081_s0, %s1090_s25  ;;  %s732_s11 = sshll.u32 %s1090_s25, 3 }
   0xf   : > { %297 = vperm.xlu1 %858, %v275_v5   ;;  %292 = vperm.xlu0 %857, %v274_v6   ;;  %v733_v27 = vld [vmem:[%s266_s15] ss:$0 sm:$0xff]  ;;  %s270_s14 = scalar_lea.vmem %s1088_s7, %s732_s11 }
  0x10   : > { %786 = vmatprep.mubr.msk.f32.mxu0 %vm454_vm0, %v398_v26 }
  0x13   : > { %359 = vperm.xlu1 %858, %v337_v7   ;;  %354 = vperm.xlu0 %857, %v336_v8   ;;  %v399_v8 = vld [vmem:[%s1084_s3 + $0x8] sm:$0xff] }
  0x17   : > { %307 = vperm.xlu1 %858, %v277_v9   ;;  %302 = vperm.xlu0 %857, %v276_v10   ;;  %v400_v9 = vld [vmem:[%s1084_s3 + $0x10] sm:$0xff]  ;;  %v401_v10 = vld [vmem:[%s1084_s3 + $0x18] sm:$0xff] }
  0x1b   : > { %369 = vperm.xlu1 %858, %v339_v11   ;;  %364 = vperm.xlu0 %857, %v338_v12   ;;  %v402_v11 = vld [vmem:[%s1084_s3 + $0x20] sm:$0xff]  ;;  %v403_v12 = vld [vmem:[%s1084_s3 + $0x28] sm:$0xff] }
  0x1f   : > { %317 = vperm.xlu1 %858, %v279_v13   ;;  %312 = vperm.xlu0 %857, %v278_v14   ;;  %v404_v13 = vld [vmem:[%s1084_s3 + $0x30] sm:$0xff]  ;;  %v405_v14 = vld [vmem:[%s1084_s3 + $0x38] sm:$0xff] }
  0x23   : > { %379 = vperm.xlu1 %858, %v341_v15   ;;  %374 = vperm.xlu0 %857, %v340_v16   ;;  %v902_v15 = vmov 0.0|0.0   ;;  %v904_v16 = vmov 0.0  }
  0x24   : > { %833 = vmatprep.subr.bf16.mxu1 %v902_v15  ;;  %814 = vmatprep.mubr.msk.f32.mxu1 %vm903_vm1, %v904_v16 }
  0x27   : > { %421 = vperm.xlu1 %858, %v407_v17   ;;  %416 = vperm.xlu0 %857, %v406_v18  }
  0x2b   : > { %431 = vperm.xlu1 %858, %v409_v19   ;;  %426 = vperm.xlu0 %857, %v408_v20  }
  0x2f   : > { %441 = vperm.xlu1 %858, %v411_v21   ;;  %436 = vperm.xlu0 %857, %v410_v22  }
  0x33   : > { %451 = vperm.xlu1 %858, %v413_v23   ;;  %446 = vperm.xlu0 %857, %v412_v24  }
  0x37   : > { %596 = vperm.xlu0 %857, %v593_v25  }
  0x86   : > { %v345_v28 = vpop.permute.xlu1 %344  ;;  %v283_v29 = vpop.permute.xlu0 %282 }
  0x87   : > { %v326_v30 = vmul.f32 %v733_v27, %v283_v29 }
  0x89   : > { %v382_v31 = vadd.f32 %v345_v28, %v326_v30 }
  0x8a   : > { %v350_v32 = vpop.permute.xlu1 %349  ;;  %v288_v33 = vpop.permute.xlu0 %287 }
  0x8b   : > { %v327_v34 = vmul.f32 %v733_v27, %v288_v33  ;;  %859 = vtanh.f32 %v382_v31 }
  0x8d   : > { %v383_v35 = vadd.f32 %v350_v32, %v327_v34 }
  0x8e   : > { %v298_v36 = vpop.permute.xlu1 %297  ;;  %v293_v37 = vpop.permute.xlu0 %292 }
  0x8f   : > { %861 = vtanh.f32 %v383_v35  ;;  %v329_v38 = vmul.f32 %v733_v27, %v298_v36  ;;  %v328_v39 = vmul.f32 %v733_v27, %v293_v37 }
  0x92   : > { %v360_v40 = vpop.permute.xlu1 %359  ;;  %v355_v41 = vpop.permute.xlu0 %354 }
  0x93   : > { %v385_v42 = vadd.f32 %v360_v40, %v329_v38  ;;  %v384_v43 = vadd.f32 %v355_v41, %v328_v39 }
  0x95   : > { %863 = vtanh.f32 %v385_v42  ;;  %v860_v46 = vpop.eup %859 }
  0x96   : > { %865 = vtanh.f32 %v384_v43  ;;  %v308_v44 = vpop.permute.xlu1 %307  ;;  %v303_v45 = vpop.permute.xlu0 %302 }
  0x97   : > { %v331_v48 = vmul.f32 %v733_v27, %v308_v44  ;;  %v330_v49 = vmul.f32 %v733_v27, %v303_v45 }
  0x99   : > { %v862_v47 = vpop.eup %861 }
  0x9a   : > { %v370_v50 = vpop.permute.xlu1 %369  ;;  %v365_v51 = vpop.permute.xlu0 %364  ;;  %v817_v52 = vpack.c.bf16 %v862_v47, %v860_v46 }
  0x9b   : > { %v387_v53 = vadd.f32 %v370_v50, %v331_v48  ;;  %v386_v54 = vadd.f32 %v365_v51, %v330_v49 }
  0x9c   : > { %818 = vmatprep.subr.bf16.mxu0 %v817_v52 }
  0x9d   : > { %867 = vtanh.f32 %v387_v53  ;;  %820 = vmatpush3.bf16.msra.mxu0 %v817_v52  ;;  %v592_v53 = vld [vmem:[%s1086_s5] sm:$0xff] }
  0x9e   : > { %869 = vtanh.f32 %v386_v54  ;;  %v318_v55 = vpop.permute.xlu1 %317  ;;  %v313_v56 = vpop.permute.xlu0 %312 }
  0x9f   : > { %v864_v57 = vpop.eup %863  ;;  %v333_v59 = vmul.f32 %v733_v27, %v318_v55  ;;  %v332_v60 = vmul.f32 %v733_v27, %v313_v56 }
  0xa0   : > { %v866_v58 = vpop.eup %865 }
  0xa1   : > { %v821_v61 = vpack.c.bf16 %v864_v57, %v866_v58 }
  0xa2   : > { %v380_v62 = vpop.permute.xlu1 %379  ;;  %v375_v63 = vpop.permute.xlu0 %374 }
  0xa3   : > { %v389_v0 = vadd.f32 %v380_v62, %v333_v59  ;;  %v388_v1 = vadd.f32 %v375_v63, %v332_v60  ;;  %822 = vmatprep.subr.bf16.mxu0 %v821_v61 }
  0xa4   : > { %824 = vmatpush3.bf16.msra.mxu0 %v821_v61 }
  0xa5   : > { %871 = vtanh.f32 %v389_v0 }
  0xa6   : > { %873 = vtanh.f32 %v388_v1  ;;  %v422_v17 = vpop.permute.xlu1 %421  ;;  %v417_v18 = vpop.permute.xlu0 %416 }
  0xa7   : > { %v868_v2 = vpop.eup %867 }
  0xa8   : > { %v870_v3 = vpop.eup %869 }
  0xa9   : > { %v825_v4 = vpack.c.bf16 %v868_v2, %v870_v3 }
  0xaa   : > { %v432_v19 = vpop.permute.xlu1 %431  ;;  %v427_v21 = vpop.permute.xlu0 %426 }
  0xab   : > { %826 = vmatprep.subr.bf16.mxu0 %v825_v4 }
  0xac   : > { %828 = vmatpush3.bf16.msra.mxu0 %v825_v4 }
  0xae   : > { %v442_v28 = vpop.permute.xlu1 %441  ;;  %v437_v30 = vpop.permute.xlu0 %436 }
  0xaf   : > { %v872_v5 = vpop.eup %871 }
  0xb0   : > { %v874_v6 = vpop.eup %873 }
  0xb1   : > { %v829_v7 = vpack.c.bf16 %v872_v5, %v874_v6 }
  0xb2   : > { %v452_v35 = vpop.permute.xlu1 %451  ;;  %v447_v38 = vpop.permute.xlu0 %446 }
  0xb3   : > { %830 = vmatprep.subr.bf16.mxu0 %v829_v7 }
  0xb4   : > { %832 = vmatpush3.bf16.msra.mxu0 %v829_v7 }
  0xb6   : > { %v597_v54 = vpop.permute.xlu0 %596 }
  0xb7   : > { %787 = vmatmul.mubr.msk.f32.vlgmr.msra.gmra.mrb[0].mxu0 %vm454_vm0, %v399_v8 }
  0xb8   : > { %789 = vmatprep.mubr.msk.f32.mxu0 %vm454_vm0, %v400_v9 }
  0xbb   : > { %790 = vmatmul.mubr.msk.f32.gmra.mrb[2].mxu0 %vm454_vm0, %v401_v10 }
  0xbc   : > { %792 = vmatprep.mubr.msk.f32.mxu0 %vm454_vm0, %v402_v11 }
  0xbf   : > { %793 = vmatmul.mubr.msk.f32.gmra.mrb[4].mxu0 %vm454_vm0, %v403_v12 }
  0xc0   : > { %795 = vmatprep.mubr.msk.f32.mxu0 %vm454_vm0, %v404_v13 }
  0xc3   : > { %796 = vmatmul.mubr.msk.f32.gmra.mrb[6].mxu0 %vm454_vm0, %v405_v14 }
 0x18a   : > { %v788_v20 = vpop.f32.mrb[0].mxu0 }
 0x18b   : > { %v551_v22 = vadd.f32 %v788_v20, %v422_v17  ;;  %v545_v23 = vpop.f32.mrb[1].mxu0 }
 0x18c   : > { %v546_v24 = vadd.f32 %v545_v23, %v417_v18 }
 0x18d   : > { %875 = vtanh.f32 %v551_v22 }
 0x18e   : > { %877 = vtanh.f32 %v546_v24  ;;  %v791_v25 = vpop.f32.mrb[2].mxu0 }
 0x18f   : > { %v561_v26 = vadd.f32 %v791_v25, %v432_v19  ;;  %v555_v27 = vpop.f32.mrb[3].mxu0 }
 0x190   : > { %v556_v29 = vadd.f32 %v555_v27, %v427_v21 }
 0x191   : > { %879 = vtanh.f32 %v561_v26 }
 0x192   : > { %881 = vtanh.f32 %v556_v29  ;;  %v794_v31 = vpop.f32.mrb[4].mxu0 }
 0x193   : > { %v571_v32 = vadd.f32 %v794_v31, %v442_v28  ;;  %v565_v33 = vpop.f32.mrb[5].mxu0 }
 0x194   : > { %v566_v34 = vadd.f32 %v565_v33, %v437_v30 }
 0x195   : > { %883 = vtanh.f32 %v571_v32 }
 0x196   : > { %885 = vtanh.f32 %v566_v34  ;;  %v797_v36 = vpop.f32.mrb[6].mxu0 }
 0x197   : > { %v876_v37 = vpop.eup %875  ;;  %v581_v39 = vadd.f32 %v797_v36, %v452_v35  ;;  %v575_v40 = vpop.f32.mrb[7].mxu0 }
 0x198   : > { %v878_v41 = vpop.eup %877  ;;  %v576_v42 = vadd.f32 %v575_v40, %v447_v38 }
 0x199   : > { %887 = vtanh.f32 %v581_v39  ;;  %v834_v43 = vpack.c.bf16 %v876_v37, %v878_v41 }
 0x19a   : > { %889 = vtanh.f32 %v576_v42 }
 0x19b   : > { %v880_v44 = vpop.eup %879  ;;  %835 = vmatpush3.bf16.msra.mxu1 %v834_v43 }
 0x19c   : > { %v882_v45 = vpop.eup %881  ;;  %836 = vmatprep.subr.bf16.mxu1 %v902_v15 }
 0x19d   : > { %v837_v46 = vpack.c.bf16 %v880_v44, %v882_v45 }
 0x19f   : > { %v884_v47 = vpop.eup %883  ;;  %838 = vmatpush3.bf16.msra.mxu1 %v837_v46 }
 0x1a0   : > { %v886_v48 = vpop.eup %885  ;;  %839 = vmatprep.subr.bf16.mxu1 %v902_v15 }
 0x1a1   : > { %v840_v49 = vpack.c.bf16 %v884_v47, %v886_v48 }
 0x1a3   : > { %v888_v50 = vpop.eup %887  ;;  %841 = vmatpush3.bf16.msra.mxu1 %v840_v49 }
 0x1a4   : > { %v890_v51 = vpop.eup %889  ;;  %842 = vmatprep.subr.bf16.mxu1 %v902_v15 }
 0x1a5   : > { %v843_v52 = vpack.c.bf16 %v888_v50, %v890_v51 }
 0x1a7   : > { %844 = vmatpush3.bf16.msra.mxu1 %v843_v52 }
 0x1aa   : > { %815 = vmatmul.mubr.msk.f32.vlgmr.msra.gmra.mrb[0].mxu1 %vm454_vm0, %v592_v53 }
 0x27d   : > { %v668_v55 = vpop.f32.mrb[0].mxu1 }
 0x27e   : > { %v669_v56 = vadd.f32 %v668_v55, %v597_v54  ;;  %v816_v57 = vpop.f32.mrb[1].mxu1 }
 0x280   : > { %v672_v58 = vmul.f32 0.5, %v669_v56 }
 0x282   : > { %891 = vtanh.f32 %v672_v58 }
 0x28c   : > { %v892_v59 = vpop.eup %891 }
 0x28d   : > { %v674_v60 = vadd.f32 1.0, %v892_v59 }
 0x28f   : > { %v675_v61 = vmul.f32 0.5, %v674_v60 }
 0x291   : > { %676 = vst [vmem:[%s270_s14] sm:$0xff] %v675_v61 }
 0x292 PF: > { %s17_s24 = sadd.s32 1, %s899_s24  }
 0x293   : > { %p14_p4 = scmp.ge.s32.totalorder %s17_s24, 4  }
 0x295   :  { %16 = sbr.rel (!%p14_p4) target bundleno = 1 (0x1), region = 78 }

</bundles_post_ra>
